<compile_context>
chip_gen: v5e
topology: v5e:2x2
jax: 0.10.0
libtpu: 0.0.40
codegen_flags: <defaults>
</compile_context>

<pallas_src>
import math
import numpy as np

import jax
import jax.numpy as jnp
from jax.experimental import pallas as pl
from jax.experimental.pallas import tpu as pltpu


def _pair(v):
    return (v, v) if isinstance(v, int) else tuple(v)


def _round_up(x, m):
    return ((x + m - 1) // m) * m


def _tap_offsets(kernel_type):
    """(row, col) tap positions within the 3x3 window, per kernel_type."""
    # TODO(synk): exact tap ordering of _C.hadamard_conv_forward (CUDA) is not
    # available; this mapping (cross / full 3x3 / center row) is our documented choice.
    if kernel_type == 0:          # "skel": 5-tap plus/cross
        return ((0, 1), (1, 0), (1, 1), (1, 2), (2, 1))
    elif kernel_type == 1:        # "ex-skel": full 3x3, row-major -> 9 taps
        return tuple((r, c) for r in range(3) for c in range(3))
    else:                         # 3 taps: center row
        return ((1, 0), (1, 1), (1, 2))


def _make_kernel(taps, dilation, wp, lout, cin, cout, spatial):
    """VPU shift-and-FMA kernel, one image per grid step.

    x_ref : [1, Cin, Lin]     flattened padded image (flat spatial on lanes)
    w_ref : [K, Cout, Cin]    per-tap weights (VMEM resident, constant index_map)
    o_ref : [1, C_ker, Lout]  C_ker = K*Cout (spatial=True) or Cout (spatial=False)
    """

    def kernel(x_ref, w_ref, o_ref):
        w = w_ref[...]                                          # tiny [K, Cout, Cin]
        acc_sum = None
        for k, (ty, tx) in enumerate(taps):                     # K in {3,5,9}: unrolled
            dk = dilation[0] * ty * wp + dilation[1] * tx       # static flat lane shift
            xs = x_ref[0, :, dk:dk + lout]                      # [Cin, Lout] shifted window
            acc = None
            for ic in range(cin):                               # Cin-term VPU FMA chain
                # [Cout,1] * [1,Lout] -> [Cout,Lout]  (lane + sublane broadcasts, no MXU)
                term = w[k, :, ic:ic + 1] * xs[ic:ic + 1, :]
                acc = term if acc is None else acc + term
            if spatial:
                # channel order k*Cout + oc  == torch.cat over taps along dim=1
                o_ref[0, k * cout:(k + 1) * cout, :] = acc
            else:
                acc_sum = acc if acc_sum is None else acc_sum + acc
        if not spatial:
            o_ref[0, :, :] = acc_sum                            # in-kernel tap sum

    return kernel


def spatial_conv_forward(x, weight, kernel_type, spatial,
                         stride=1, padding=0, dilation=1):
    """x: [N, Cin, H, W] (NCHW). weight: [Cout, Cin, K]. Returns NCHW output."""
    stride = _pair(stride)
    padding = _pair(padding)
    dilation = _pair(dilation)
    if stride != (1, 1):
        # TODO(synk): stride > 1 would need a strided/gathered output remap.
        raise NotImplementedError("spatial_conv_forward: only stride=1 is implemented")

    taps = _tap_offsets(kernel_type)
    K = len(taps)
    N, Cin, H, W = x.shape
    Cout = weight.shape[0]
    assert weight.shape == (Cout, Cin, K)

    # output spatial size of a (dilated) 3x3 conv - matches _SpatialConv._output_size
    Ho = (H + 2 * padding[0] - (dilation[0] * 2 + 1)) // stride[0] + 1
    Wo = (W + 2 * padding[1] - (dilation[1] * 2 + 1)) // stride[1] + 1
    Hp = H + 2 * padding[0]
    Wp = W + 2 * padding[1]

    # Flat-space geometry: output position p = h*Wp + w (columns w >= Wo are
    # garbage and sliced off below); tap k reads p + dk with
    # dk = dil_h*ty*Wp + dil_w*tx.  Valid positions only ever read real padded
    # data (< Hp*Wp); the extra flat tail padding feeds garbage columns only.
    Lout = Ho * Wp
    dmax = dilation[0] * 2 * Wp + dilation[1] * 2
    Lin = _round_up(Lout + dmax, 128)          # lane-aligned, >= Hp*Wp

    # Glue: zero-pad, flatten spatial, pad flat tail (cheap XLA copies; no transposes).
    # f32 kept for exact parity with the reference; bf16 inputs would halve HBM
    # traffic on v6e/v7x if the model tolerates it.
    xp = jnp.pad(x.astype(jnp.float32),
                 ((0, 0), (0, 0), (padding[0], padding[0]), (padding[1], padding[1])))
    x_flat = xp.reshape(N, Cin, Hp * Wp)
    x_flat = jnp.pad(x_flat, ((0, 0), (0, 0), (0, Lin - Hp * Wp)))

    w_k = jnp.transpose(weight, (2, 0, 1)).astype(jnp.float32)     # [K, Cout, Cin]

    C_ker = K * Cout if spatial else Cout
    kernel = _make_kernel(taps, dilation, Wp, Lout, Cin, Cout, spatial)

    out_flat = pl.pallas_call(
        kernel,
        out_shape=jax.ShapeDtypeStruct((N, C_ker, Lout), jnp.float32),
        grid=(N,),                                   # one image per step, pipelined
        in_specs=[
            pl.BlockSpec((1, Cin, Lin), lambda n: (n, 0, 0)),
            pl.BlockSpec((K, Cout, Cin), lambda n: (0, 0, 0)),   # VMEM-resident weights
        ],
        out_specs=pl.BlockSpec((1, C_ker, Lout), lambda n: (n, 0, 0)),
        compiler_params=pltpu.CompilerParams(dimension_semantics=("parallel",)),
    )(x_flat, w_k)                                               # [N, C_ker, Ho*Wp]

    # [N, C, Ho*Wp] -> [N, C, Ho, Wp] -> drop garbage columns -> [N, C, Ho, Wo]
    out = out_flat.reshape(N, C_ker, Ho, Wp)[:, :, :, :Wo]
    return out.astype(x.dtype)
    # norm / activation / empty-input fast path of SpatialConv are None / unused here.


def spatial_conv_reference(x, weight, kernel_type, spatial,
                           stride=1, padding=0, dilation=1):
    """Pure-jnp reference with identical semantics (for validation, stride=1)."""
    stride = _pair(stride)
    padding = _pair(padding)
    dilation = _pair(dilation)
    taps = _tap_offsets(kernel_type)
    K = len(taps)
    N, Cin, H, W = x.shape
    Cout = weight.shape[0]
    Ho = (H + 2 * padding[0] - (dilation[0] * 2 + 1)) // stride[0] + 1
    Wo = (W + 2 * padding[1] - (dilation[1] * 2 + 1)) // stride[1] + 1
    xp = jnp.pad(x, ((0, 0), (0, 0), (padding[0], padding[0]), (padding[1], padding[1])))
    outs = []
    for k, (ty, tx) in enumerate(taps):
        oy, ox = dilation[0] * ty, dilation[1] * tx
        xs = xp[:, :, oy:oy + Ho, ox:ox + Wo]                      # stride == 1
        outs.append(jnp.einsum("nihw,oi->nohw", xs, weight[:, :, k]))
    stacked = jnp.stack(outs, axis=0)                              # [K, N, Cout, Ho, Wo]
    if spatial:
        return jnp.transpose(stacked, (1, 0, 2, 3, 4)).reshape(N, K * Cout, Ho, Wo)
    return jnp.sum(stacked, axis=0)


if __name__ == "__main__":
    # SpatialConv(in_channels=4, out_channels=4, kernel_type=0, spatial=True, padding=1)
    N, Cin, H, W = 2, 4, 16, 16
    Cout = 4
    padding = 1

    key = jax.random.PRNGKey(0)
    kx, kw5, kw9 = jax.random.split(key, 3)
    x = jax.random.normal(kx, (N, Cin, H, W), dtype=jnp.float32)

    def kaiming_uniform(k, cout, cin, ktaps):
        # kaiming_uniform_(nonlinearity='relu') on weight [Cout, Cin, K]: fan_in = Cin*K
        bound = math.sqrt(6.0 / (cin * ktaps))
        return jax.random.uniform(k, (cout, cin, ktaps), jnp.float32, -bound, bound)

    # --- kernel_type=0 ("skel", K=5) ---
    K5 = len(_tap_offsets(0))
    w5 = kaiming_uniform(kw5, Cout, Cin, K5)

    # spatial=True branch (channel-concat over taps)
    out_spatial = jax.block_until_ready(
        spatial_conv_forward(x, w5, 0, True, stride=1, padding=padding, dilation=1))
    assert out_spatial.shape == (N, Cout * K5, H, W), out_spatial.shape
    ref_spatial = spatial_conv_reference(x, w5, 0, True, 1, padding, 1)
    np.testing.assert_allclose(np.asarray(out_spatial), np.asarray(ref_spatial),
                               rtol=1e-5, atol=1e-5)

    # spatial=False branch (sum over taps == sparse 3x3 conv), summed in-kernel
    out_sum = jax.block_until_ready(
        spatial_conv_forward(x, w5, 0, False, stride=1, padding=padding, dilation=1))
    assert out_sum.shape == (N, Cout, H, W), out_sum.shape
    ref_sum = spatial_conv_reference(x, w5, 0, False, 1, padding, 1)
    np.testing.assert_allclose(np.asarray(out_sum), np.asarray(ref_sum),
                               rtol=1e-5, atol=1e-5)

    # --- kernel_type=1 ("ex-skel", K=9), dilation=2 / padding=2, spatial=False ---
    K9 = len(_tap_offsets(1))
    w9 = kaiming_uniform(kw9, Cout, Cin, K9)
    out_d2 = jax.block_until_ready(
        spatial_conv_forward(x, w9, 1, False, stride=1, padding=2, dilation=2))
    ref_d2 = spatial_conv_reference(x, w9, 1, False, 1, 2, 2)
    assert out_d2.shape == ref_d2.shape == (N, Cout, H, W), out_d2.shape
    np.testing.assert_allclose(np.asarray(out_d2), np.asarray(ref_d2),
                               rtol=1e-5, atol=1e-5)

    print("KERNEL_OK")
</pallas_src>

<mosaic_0001>
module attributes {stable_mosaic.version = 11 : i64} {
  func.func @kernel(%arg0: i32, %arg1: memref<1x4x384xf32, #tpu.memory_space<vmem>>, %arg2: memref<5x4x4xf32, #tpu.memory_space<vmem>>, %arg3: memref<1x20x288xf32, #tpu.memory_space<vmem>>) attributes {dimension_semantics = [#tpu.dimension_semantics<parallel>], iteration_bounds = array<i64: 2>, scalar_prefetch = 0 : i64, scratch_operands = 0 : i64, tpu.core_type = #tpu.core_type<tc>, window_params = [{transform_indices = @transform_0, window_bounds = array<i64: 1, 4, 384>}, {pipeline_mode = #tpu.pipeline_mode<synchronous>, transform_indices = @transform_1, window_bounds = array<i64: 5, 4, 4>}, {transform_indices = @transform_2, window_bounds = array<i64: 1, 20, 288>}]} {
    %c0 = arith.constant 0 : index
    %c0_0 = arith.constant 0 : index
    %c0_1 = arith.constant 0 : index
    %0 = vector.load %arg2[%c0, %c0_0, %c0_1] : memref<5x4x4xf32, #tpu.memory_space<vmem>>, vector<5x4x4xf32>
    %c0_2 = arith.constant 0 : index
    %c0_3 = arith.constant 0 : index
    %c1 = arith.constant 1 : index
    %1 = vector.load %arg1[%c0_2, %c0_3, %c1] : memref<1x4x384xf32, #tpu.memory_space<vmem>>, vector<1x4x288xf32>
    %2 = vector.shape_cast %1 : vector<1x4x288xf32> to vector<4x288xf32>
    %3 = vector.extract_strided_slice %0 {offsets = [0, 0, 0], sizes = [1, 4, 1], strides = [1, 1, 1]} : vector<5x4x4xf32> to vector<1x4x1xf32>
    %4 = vector.shape_cast %3 : vector<1x4x1xf32> to vector<4x1xf32>
    %5 = vector.extract_strided_slice %2 {offsets = [0, 0], sizes = [1, 288], strides = [1, 1]} : vector<4x288xf32> to vector<1x288xf32>
    %6 = vector.broadcast %4 : vector<4x1xf32> to vector<4x288xf32>
    %7 = vector.broadcast %5 : vector<1x288xf32> to vector<4x288xf32>
    %8 = arith.mulf %6, %7 : vector<4x288xf32>
    %9 = vector.extract_strided_slice %0 {offsets = [0, 0, 1], sizes = [1, 4, 1], strides = [1, 1, 1]} : vector<5x4x4xf32> to vector<1x4x1xf32>
    %10 = vector.shape_cast %9 : vector<1x4x1xf32> to vector<4x1xf32>
    %11 = vector.extract_strided_slice %2 {offsets = [1, 0], sizes = [1, 288], strides = [1, 1]} : vector<4x288xf32> to vector<1x288xf32>
    %12 = vector.broadcast %10 : vector<4x1xf32> to vector<4x288xf32>
    %13 = vector.broadcast %11 : vector<1x288xf32> to vector<4x288xf32>
    %14 = arith.mulf %12, %13 : vector<4x288xf32>
    %15 = arith.addf %8, %14 : vector<4x288xf32>
    %16 = vector.extract_strided_slice %0 {offsets = [0, 0, 2], sizes = [1, 4, 1], strides = [1, 1, 1]} : vector<5x4x4xf32> to vector<1x4x1xf32>
    %17 = vector.shape_cast %16 : vector<1x4x1xf32> to vector<4x1xf32>
    %18 = vector.extract_strided_slice %2 {offsets = [2, 0], sizes = [1, 288], strides = [1, 1]} : vector<4x288xf32> to vector<1x288xf32>
    %19 = vector.broadcast %17 : vector<4x1xf32> to vector<4x288xf32>
    %20 = vector.broadcast %18 : vector<1x288xf32> to vector<4x288xf32>
    %21 = arith.mulf %19, %20 : vector<4x288xf32>
    %22 = arith.addf %15, %21 : vector<4x288xf32>
    %23 = vector.extract_strided_slice %0 {offsets = [0, 0, 3], sizes = [1, 4, 1], strides = [1, 1, 1]} : vector<5x4x4xf32> to vector<1x4x1xf32>
    %24 = vector.shape_cast %23 : vector<1x4x1xf32> to vector<4x1xf32>
    %25 = vector.extract_strided_slice %2 {offsets = [3, 0], sizes = [1, 288], strides = [1, 1]} : vector<4x288xf32> to vector<1x288xf32>
    %26 = vector.broadcast %24 : vector<4x1xf32> to vector<4x288xf32>
    %27 = vector.broadcast %25 : vector<1x288xf32> to vector<4x288xf32>
    %28 = arith.mulf %26, %27 : vector<4x288xf32>
    %29 = arith.addf %22, %28 : vector<4x288xf32>
    %c0_4 = arith.constant 0 : index
    %c0_5 = arith.constant 0 : index
    %c0_6 = arith.constant 0 : index
    %30 = vector.load %arg3[%c0_4, %c0_5, %c0_6] : memref<1x20x288xf32, #tpu.memory_space<vmem>>, vector<1x4x288xf32>
    %31 = vector.shape_cast %30 : vector<1x4x288xf32> to vector<4x288xf32>
    %32 = vector.shape_cast %29 : vector<4x288xf32> to vector<1x4x288xf32>
    tpu.vector_store %arg3[%c0_4, %c0_5, %c0_6], %32 {strides = array<i32>} : memref<1x20x288xf32, #tpu.memory_space<vmem>>, vector<1x4x288xf32>,
    %c0_7 = arith.constant 0 : index
    %c0_8 = arith.constant 0 : index
    %c18 = arith.constant 18 : index
    %33 = vector.load %arg1[%c0_7, %c0_8, %c18] : memref<1x4x384xf32, #tpu.memory_space<vmem>>, vector<1x4x288xf32>
    %34 = vector.shape_cast %33 : vector<1x4x288xf32> to vector<4x288xf32>
    %35 = vector.extract_strided_slice %0 {offsets = [1, 0, 0], sizes = [1, 4, 1], strides = [1, 1, 1]} : vector<5x4x4xf32> to vector<1x4x1xf32>
    %36 = vector.shape_cast %35 : vector<1x4x1xf32> to vector<4x1xf32>
    %37 = vector.extract_strided_slice %34 {offsets = [0, 0], sizes = [1, 288], strides = [1, 1]} : vector<4x288xf32> to vector<1x288xf32>
    %38 = vector.broadcast %36 : vector<4x1xf32> to vector<4x288xf32>
    %39 = vector.broadcast %37 : vector<1x288xf32> to vector<4x288xf32>
    %40 = arith.mulf %38, %39 : vector<4x288xf32>
    %41 = vector.extract_strided_slice %0 {offsets = [1, 0, 1], sizes = [1, 4, 1], strides = [1, 1, 1]} : vector<5x4x4xf32> to vector<1x4x1xf32>
    %42 = vector.shape_cast %41 : vector<1x4x1xf32> to vector<4x1xf32>
    %43 = vector.extract_strided_slice %34 {offsets = [1, 0], sizes = [1, 288], strides = [1, 1]} : vector<4x288xf32> to vector<1x288xf32>
    %44 = vector.broadcast %42 : vector<4x1xf32> to vector<4x288xf32>
    %45 = vector.broadcast %43 : vector<1x288xf32> to vector<4x288xf32>
    %46 = arith.mulf %44, %45 : vector<4x288xf32>
    %47 = arith.addf %40, %46 : vector<4x288xf32>
    %48 = vector.extract_strided_slice %0 {offsets = [1, 0, 2], sizes = [1, 4, 1], strides = [1, 1, 1]} : vector<5x4x4xf32> to vector<1x4x1xf32>
    %49 = vector.shape_cast %48 : vector<1x4x1xf32> to vector<4x1xf32>
    %50 = vector.extract_strided_slice %34 {offsets = [2, 0], sizes = [1, 288], strides = [1, 1]} : vector<4x288xf32> to vector<1x288xf32>
    %51 = vector.broadcast %49 : vector<4x1xf32> to vector<4x288xf32>
    %52 = vector.broadcast %50 : vector<1x288xf32> to vector<4x288xf32>
    %53 = arith.mulf %51, %52 : vector<4x288xf32>
    %54 = arith.addf %47, %53 : vector<4x288xf32>
    %55 = vector.extract_strided_slice %0 {offsets = [1, 0, 3], sizes = [1, 4, 1], strides = [1, 1, 1]} : vector<5x4x4xf32> to vector<1x4x1xf32>
    %56 = vector.shape_cast %55 : vector<1x4x1xf32> to vector<4x1xf32>
    %57 = vector.extract_strided_slice %34 {offsets = [3, 0], sizes = [1, 288], strides = [1, 1]} : vector<4x288xf32> to vector<1x288xf32>
    %58 = vector.broadcast %56 : vector<4x1xf32> to vector<4x288xf32>
    %59 = vector.broadcast %57 : vector<1x288xf32> to vector<4x288xf32>
    %60 = arith.mulf %58, %59 : vector<4x288xf32>
    %61 = arith.addf %54, %60 : vector<4x288xf32>
    %c0_9 = arith.constant 0 : index
    %c4 = arith.constant 4 : index
    %c0_10 = arith.constant 0 : index
    %62 = vector.load %arg3[%c0_9, %c4, %c0_10] : memref<1x20x288xf32, #tpu.memory_space<vmem>>, vector<1x4x288xf32>
    %63 = vector.shape_cast %62 : vector<1x4x288xf32> to vector<4x288xf32>
    %64 = vector.shape_cast %61 : vector<4x288xf32> to vector<1x4x288xf32>
    tpu.vector_store %arg3[%c0_9, %c4, %c0_10], %64 {strides = array<i32>} : memref<1x20x288xf32, #tpu.memory_space<vmem>>, vector<1x4x288xf32>,
    %c0_11 = arith.constant 0 : index
    %c0_12 = arith.constant 0 : index
    %c19 = arith.constant 19 : index
    %65 = vector.load %arg1[%c0_11, %c0_12, %c19] : memref<1x4x384xf32, #tpu.memory_space<vmem>>, vector<1x4x288xf32>
    %66 = vector.shape_cast %65 : vector<1x4x288xf32> to vector<4x288xf32>
    %67 = vector.extract_strided_slice %0 {offsets = [2, 0, 0], sizes = [1, 4, 1], strides = [1, 1, 1]} : vector<5x4x4xf32> to vector<1x4x1xf32>
    %68 = vector.shape_cast %67 : vector<1x4x1xf32> to vector<4x1xf32>
    %69 = vector.extract_strided_slice %66 {offsets = [0, 0], sizes = [1, 288], strides = [1, 1]} : vector<4x288xf32> to vector<1x288xf32>
    %70 = vector.broadcast %68 : vector<4x1xf32> to vector<4x288xf32>
    %71 = vector.broadcast %69 : vector<1x288xf32> to vector<4x288xf32>
    %72 = arith.mulf %70, %71 : vector<4x288xf32>
    %73 = vector.extract_strided_slice %0 {offsets = [2, 0, 1], sizes = [1, 4, 1], strides = [1, 1, 1]} : vector<5x4x4xf32> to vector<1x4x1xf32>
    %74 = vector.shape_cast %73 : vector<1x4x1xf32> to vector<4x1xf32>
    %75 = vector.extract_strided_slice %66 {offsets = [1, 0], sizes = [1, 288], strides = [1, 1]} : vector<4x288xf32> to vector<1x288xf32>
    %76 = vector.broadcast %74 : vector<4x1xf32> to vector<4x288xf32>
    %77 = vector.broadcast %75 : vector<1x288xf32> to vector<4x288xf32>
    %78 = arith.mulf %76, %77 : vector<4x288xf32>
    %79 = arith.addf %72, %78 : vector<4x288xf32>
    %80 = vector.extract_strided_slice %0 {offsets = [2, 0, 2], sizes = [1, 4, 1], strides = [1, 1, 1]} : vector<5x4x4xf32> to vector<1x4x1xf32>
    %81 = vector.shape_cast %80 : vector<1x4x1xf32> to vector<4x1xf32>
    %82 = vector.extract_strided_slice %66 {offsets = [2, 0], sizes = [1, 288], strides = [1, 1]} : vector<4x288xf32> to vector<1x288xf32>
    %83 = vector.broadcast %81 : vector<4x1xf32> to vector<4x288xf32>
    %84 = vector.broadcast %82 : vector<1x288xf32> to vector<4x288xf32>
    %85 = arith.mulf %83, %84 : vector<4x288xf32>
    %86 = arith.addf %79, %85 : vector<4x288xf32>
    %87 = vector.extract_strided_slice %0 {offsets = [2, 0, 3], sizes = [1, 4, 1], strides = [1, 1, 1]} : vector<5x4x4xf32> to vector<1x4x1xf32>
    %88 = vector.shape_cast %87 : vector<1x4x1xf32> to vector<4x1xf32>
    %89 = vector.extract_strided_slice %66 {offsets = [3, 0], sizes = [1, 288], strides = [1, 1]} : vector<4x288xf32> to vector<1x288xf32>
    %90 = vector.broadcast %88 : vector<4x1xf32> to vector<4x288xf32>
    %91 = vector.broadcast %89 : vector<1x288xf32> to vector<4x288xf32>
    %92 = arith.mulf %90, %91 : vector<4x288xf32>
    %93 = arith.addf %86, %92 : vector<4x288xf32>
    %c0_13 = arith.constant 0 : index
    %c8 = arith.constant 8 : index
    %c0_14 = arith.constant 0 : index
    %94 = vector.load %arg3[%c0_13, %c8, %c0_14] : memref<1x20x288xf32, #tpu.memory_space<vmem>>, vector<1x4x288xf32>
    %95 = vector.shape_cast %94 : vector<1x4x288xf32> to vector<4x288xf32>
    %96 = vector.shape_cast %93 : vector<4x288xf32> to vector<1x4x288xf32>
    tpu.vector_store %arg3[%c0_13, %c8, %c0_14], %96 {strides = array<i32>} : memref<1x20x288xf32, #tpu.memory_space<vmem>>, vector<1x4x288xf32>,
    %c0_15 = arith.constant 0 : index
    %c0_16 = arith.constant 0 : index
    %c20 = arith.constant 20 : index
    %97 = vector.load %arg1[%c0_15, %c0_16, %c20] : memref<1x4x384xf32, #tpu.memory_space<vmem>>, vector<1x4x288xf32>
    %98 = vector.shape_cast %97 : vector<1x4x288xf32> to vector<4x288xf32>
    %99 = vector.extract_strided_slice %0 {offsets = [3, 0, 0], sizes = [1, 4, 1], strides = [1, 1, 1]} : vector<5x4x4xf32> to vector<1x4x1xf32>
    %100 = vector.shape_cast %99 : vector<1x4x1xf32> to vector<4x1xf32>
    %101 = vector.extract_strided_slice %98 {offsets = [0, 0], sizes = [1, 288], strides = [1, 1]} : vector<4x288xf32> to vector<1x288xf32>
    %102 = vector.broadcast %100 : vector<4x1xf32> to vector<4x288xf32>
    %103 = vector.broadcast %101 : vector<1x288xf32> to vector<4x288xf32>
    %104 = arith.mulf %102, %103 : vector<4x288xf32>
    %105 = vector.extract_strided_slice %0 {offsets = [3, 0, 1], sizes = [1, 4, 1], strides = [1, 1, 1]} : vector<5x4x4xf32> to vector<1x4x1xf32>
    %106 = vector.shape_cast %105 : vector<1x4x1xf32> to vector<4x1xf32>
    %107 = vector.extract_strided_slice %98 {offsets = [1, 0], sizes = [1, 288], strides = [1, 1]} : vector<4x288xf32> to vector<1x288xf32>
    %108 = vector.broadcast %106 : vector<4x1xf32> to vector<4x288xf32>
    %109 = vector.broadcast %107 : vector<1x288xf32> to vector<4x288xf32>
    %110 = arith.mulf %108, %109 : vector<4x288xf32>
    %111 = arith.addf %104, %110 : vector<4x288xf32>
    %112 = vector.extract_strided_slice %0 {offsets = [3, 0, 2], sizes = [1, 4, 1], strides = [1, 1, 1]} : vector<5x4x4xf32> to vector<1x4x1xf32>
    %113 = vector.shape_cast %112 : vector<1x4x1xf32> to vector<4x1xf32>
    %114 = vector.extract_strided_slice %98 {offsets = [2, 0], sizes = [1, 288], strides = [1, 1]} : vector<4x288xf32> to vector<1x288xf32>
    %115 = vector.broadcast %113 : vector<4x1xf32> to vector<4x288xf32>
    %116 = vector.broadcast %114 : vector<1x288xf32> to vector<4x288xf32>
    %117 = arith.mulf %115, %116 : vector<4x288xf32>
    %118 = arith.addf %111, %117 : vector<4x288xf32>
    %119 = vector.extract_strided_slice %0 {offsets = [3, 0, 3], sizes = [1, 4, 1], strides = [1, 1, 1]} : vector<5x4x4xf32> to vector<1x4x1xf32>
    %120 = vector.shape_cast %119 : vector<1x4x1xf32> to vector<4x1xf32>
    %121 = vector.extract_strided_slice %98 {offsets = [3, 0], sizes = [1, 288], strides = [1, 1]} : vector<4x288xf32> to vector<1x288xf32>
    %122 = vector.broadcast %120 : vector<4x1xf32> to vector<4x288xf32>
    %123 = vector.broadcast %121 : vector<1x288xf32> to vector<4x288xf32>
    %124 = arith.mulf %122, %123 : vector<4x288xf32>
    %125 = arith.addf %118, %124 : vector<4x288xf32>
    %c0_17 = arith.constant 0 : index
    %c12 = arith.constant 12 : index
    %c0_18 = arith.constant 0 : index
    %126 = vector.load %arg3[%c0_17, %c12, %c0_18] : memref<1x20x288xf32, #tpu.memory_space<vmem>>, vector<1x4x288xf32>
    %127 = vector.shape_cast %126 : vector<1x4x288xf32> to vector<4x288xf32>
    %128 = vector.shape_cast %125 : vector<4x288xf32> to vector<1x4x288xf32>
    tpu.vector_store %arg3[%c0_17, %c12, %c0_18], %128 {strides = array<i32>} : memref<1x20x288xf32, #tpu.memory_space<vmem>>, vector<1x4x288xf32>,
    %c0_19 = arith.constant 0 : index
    %c0_20 = arith.constant 0 : index
    %c37 = arith.constant 37 : index
    %129 = vector.load %arg1[%c0_19, %c0_20, %c37] : memref<1x4x384xf32, #tpu.memory_space<vmem>>, vector<1x4x288xf32>
    %130 = vector.shape_cast %129 : vector<1x4x288xf32> to vector<4x288xf32>
    %131 = vector.extract_strided_slice %0 {offsets = [4, 0, 0], sizes = [1, 4, 1], strides = [1, 1, 1]} : vector<5x4x4xf32> to vector<1x4x1xf32>
    %132 = vector.shape_cast %131 : vector<1x4x1xf32> to vector<4x1xf32>
    %133 = vector.extract_strided_slice %130 {offsets = [0, 0], sizes = [1, 288], strides = [1, 1]} : vector<4x288xf32> to vector<1x288xf32>
    %134 = vector.broadcast %132 : vector<4x1xf32> to vector<4x288xf32>
    %135 = vector.broadcast %133 : vector<1x288xf32> to vector<4x288xf32>
    %136 = arith.mulf %134, %135 : vector<4x288xf32>
    %137 = vector.extract_strided_slice %0 {offsets = [4, 0, 1], sizes = [1, 4, 1], strides = [1, 1, 1]} : vector<5x4x4xf32> to vector<1x4x1xf32>
    %138 = vector.shape_cast %137 : vector<1x4x1xf32> to vector<4x1xf32>
    %139 = vector.extract_strided_slice %130 {offsets = [1, 0], sizes = [1, 288], strides = [1, 1]} : vector<4x288xf32> to vector<1x288xf32>
    %140 = vector.broadcast %138 : vector<4x1xf32> to vector<4x288xf32>
    %141 = vector.broadcast %139 : vector<1x288xf32> to vector<4x288xf32>
    %142 = arith.mulf %140, %141 : vector<4x288xf32>
    %143 = arith.addf %136, %142 : vector<4x288xf32>
    %144 = vector.extract_strided_slice %0 {offsets = [4, 0, 2], sizes = [1, 4, 1], strides = [1, 1, 1]} : vector<5x4x4xf32> to vector<1x4x1xf32>
    %145 = vector.shape_cast %144 : vector<1x4x1xf32> to vector<4x1xf32>
    %146 = vector.extract_strided_slice %130 {offsets = [2, 0], sizes = [1, 288], strides = [1, 1]} : vector<4x288xf32> to vector<1x288xf32>
    %147 = vector.broadcast %145 : vector<4x1xf32> to vector<4x288xf32>
    %148 = vector.broadcast %146 : vector<1x288xf32> to vector<4x288xf32>
    %149 = arith.mulf %147, %148 : vector<4x288xf32>
    %150 = arith.addf %143, %149 : vector<4x288xf32>
    %151 = vector.extract_strided_slice %0 {offsets = [4, 0, 3], sizes = [1, 4, 1], strides = [1, 1, 1]} : vector<5x4x4xf32> to vector<1x4x1xf32>
    %152 = vector.shape_cast %151 : vector<1x4x1xf32> to vector<4x1xf32>
    %153 = vector.extract_strided_slice %130 {offsets = [3, 0], sizes = [1, 288], strides = [1, 1]} : vector<4x288xf32> to vector<1x288xf32>
    %154 = vector.broadcast %152 : vector<4x1xf32> to vector<4x288xf32>
    %155 = vector.broadcast %153 : vector<1x288xf32> to vector<4x288xf32>
    %156 = arith.mulf %154, %155 : vector<4x288xf32>
    %157 = arith.addf %150, %156 : vector<4x288xf32>
    %c0_21 = arith.constant 0 : index
    %c16 = arith.constant 16 : index
    %c0_22 = arith.constant 0 : index
    %158 = vector.load %arg3[%c0_21, %c16, %c0_22] : memref<1x20x288xf32, #tpu.memory_space<vmem>>, vector<1x4x288xf32>
    %159 = vector.shape_cast %158 : vector<1x4x288xf32> to vector<4x288xf32>
    %160 = vector.shape_cast %157 : vector<4x288xf32> to vector<1x4x288xf32>
    tpu.vector_store %arg3[%c0_21, %c16, %c0_22], %160 {strides = array<i32>} : memref<1x20x288xf32, #tpu.memory_space<vmem>>, vector<1x4x288xf32>,
    return
  }
  func.func @transform_0(%arg0: i32) -> (i32, i32, i32) {
    %c0_i32 = arith.constant 0 : i32
    %c0_i32_0 = arith.constant 0 : i32
    %c0_i32_1 = arith.constant 0 : i32
    return %arg0, %c0_i32, %c0_i32_0 : i32, i32, i32
  }
  func.func @transform_1(%arg0: i32) -> (i32, i32, i32) {
    %c0_i32 = arith.constant 0 : i32
    %c0_i32_0 = arith.constant 0 : i32
    %c0_i32_1 = arith.constant 0 : i32
    %c0_i32_2 = arith.constant 0 : i32
    return %c0_i32, %c0_i32_0, %c0_i32_1 : i32, i32, i32
  }
  func.func @transform_2(%arg0: i32) -> (i32, i32, i32) {
    %c0_i32 = arith.constant 0 : i32
    %c0_i32_0 = arith.constant 0 : i32
    %c0_i32_1 = arith.constant 0 : i32
    return %arg0, %c0_i32, %c0_i32_0 : i32, i32, i32
  }
}

</mosaic_0001>

<bundles_post_ra>
// kernel: tpu_custom_call.1
= control target key start
LH: loop header
LB: loop body
LE: loop exit
PB: predicated region body
PF: predicated region fallthrough
CT: control target
= control target key end

     0   :  { %s766_s9 = smov 0   ;;  %s965_s0 = inlined_call_operand.vmem [shape: f32[2,4,384], index: 0, kind: input, shape index: {}]   ;;  %s966_s1 = inlined_call_operand.vmem [shape: f32[5,4,4], index: 1, kind: input, shape index: {}]   ;;  %s967_s2 = inlined_call_operand.vmem [shape: f32[2,20,288], index: 2, kind: output, shape index: {}]  }
   0x1 LB: > { %s692_s10 = sadd.s32 4294967295, %s740_s9   ;;  %p696_p0 = scmp.ge.s32.totalorder %s740_s9, 1  ;;  %s740_s9 = sphi %s766_s9, %s12_s9  }
   0x2   : > { %p112_p1 = scmp.lt.s32.totalorder %s740_s9, 3 }
   0x4   : > { %p113_p2 = pnand %p696_p0, %p112_p1 }
   0x5   : > { %p134_p3 = scmp.lt.s32.totalorder (!%p113_p2), %s692_s10, 1  ;;  %s746_s25 = smov (!%p113_p2), 127  }
   0x6   : > { %116 = sbr.rel (%p113_p2) target bundleno = 311 (0x137), region = 28  ;;  %s747_s26 = smov (!%p113_p2), 109  }
   0x7   : > { %s748_s27 = smov (!%p113_p2), 110   ;;  %s749_s28 = smov (!%p113_p2), 108  }
   0x8   : > { %s750_s29 = smov (!%p113_p2), 91  }
   0xb   : > { %v144_v0 = vld [vmem:[%s966_s1] sm:$0xf]  ;;  %v742_v1 = vmov 2   ;;  %v743_v2 = vmov 1   ;;  %v145_v3 = vld [vmem:[%s966_s1 + $0x4] sm:$0xf] }
   0xc   : > { %721 = vset.pattern.permute.xlu1 %v742_v1  ;;  %720 = vset.pattern.permute.xlu0 %v743_v2  ;;  %v744_v4 = vmov 0   ;;  %v745_v5 = vmov 3   ;;  %v147_v6 = vld [vmem:[%s966_s1 + $0xc] sm:$0xf]  ;;  %v146_v7 = vld [vmem:[%s966_s1 + $0x8] sm:$0xf] }
   0xd   : > { %190 = vperm.xlu1 %721, %v144_v0   ;;  %171 = vperm.xlu0 %720, %v144_v0   ;;  %v148_v8 = vld [vmem:[%s966_s1 + $0x10] sm:$0xf]  ;;  %s969_s10 = smov (!%p134_p3, %s692_s10), 1  ;;  %vm236_vm0 = vcmask 1039360   ;;  %vm244_vm1 = vcmask 257024   ;;  %vm344_vm2 = vcmask 261124  }
   0xe   : > { %723 = vset.pattern.permute.xlu2 %v744_v4  ;;  %s701_s21 = smul.u32 12, %s969_s10  ;;  %vm433_vm3 = vcmask 891904   ;;  %vm336_vm4 = vcmask 900096   ;;  %vm532_vm5 = vcmask 883712   ;;  %vm628_vm6 = vcmask 744448  }
   0xf   : > { %250 = vperm.xlu2 %723, %v145_v3   ;;  %s702_s30 = smul.u32 72, %s969_s10 }
  0x10   : > { %s807_s24 = scalar_lea.vmem %s965_s0, %s701_s21 }
  0x11   : > { %v246_v14 = vld [vmem:[%s807_s24] sm:$0xff]  ;;  %v813_v16 = vld [vmem:[%s807_s24 + $0x8] sm:$0xf]  ;;  %s940_s5 = scalar_lea.vmem %s967_s2, %s702_s30 }
  0x12   : > { %v150_v17 = vld [vmem:[%s807_s24 + $0x8] sm:$0xf]  ;;  %v174_v20 = vperm.slane %v246_v14, 1  ;;  %v255_v23 = vperm.slane %v246_v14, 0  ;;  %v256_v24 = vperm.slane %v246_v14, 4  ;;  %v257_v25 = vperm.slane %v813_v16, 0 }
  0x13   : > { %v176_v21 = vperm.slane %v150_v17, 1  ;;  %v160_v22 = vperm.slane %v150_v17, 0  ;;  %v193_v26 = vperm.slane %v246_v14, 2  ;;  %v195_v27 = vperm.slane %v150_v17, 2  ;;  %v832_v41 = vld [vmem:[%s807_s24 + $0x8] sm:$0xf] }
  0x14   : > { %v309_v28 = vperm.slane %v246_v14, 3  ;;  %v194_v29 = vperm.slane %v246_v14, 6  ;;  %v175_v30 = vperm.slane %v246_v14, 5  ;;  %v214_v31 = vperm.slane %v150_v17, 3  ;;  %v347_v52 = vld [vmem:[%s807_s24 + $0x8] sm:$0xf] }
  0x15   : > { %722 = vset.pattern.permute.xlu1 %v745_v5  ;;  %268 = vperm.xlu0 %720, %v145_v3   ;;  %v821_v32 = vperm.slane %v174_v20, 1  ;;  %v182_v33 = vperm.slane %v176_v21, 1  ;;  %v166_v34 = vperm.slane %v160_v22, 0  ;;  %v823_v35 = vperm.slane %v255_v23, 0 }
  0x16   : > { %209 = vperm.xlu1 %722, %v144_v0   ;;  %v825_v36 = vperm.slane %v256_v24, 0  ;;  %v827_v37 = vperm.slane %v257_v25, 0  ;;  %v310_v38 = vperm.slane %v246_v14, 7  ;;  %v829_v39 = vperm.slane %v193_v26, 2 }
  0x17   : > { %726 = vset.pattern.permute.xlu2 %v745_v5  ;;  %v201_v40 = vperm.slane %v195_v27, 2  ;;  %v834_v42 = vperm.slane %v309_v28, 3  ;;  %v836_v43 = vperm.slane %v194_v29, 2  ;;  %v838_v44 = vperm.slane %v175_v30, 1 }
  0x18   : > { %306 = vperm.xlu2 %726, %v145_v3   ;;  %v220_v45 = vperm.slane %v214_v31, 3  ;;  %v453_v53 = vperm.slane %v832_v41, 0  ;;  %v357_v56 = vperm.slane %v347_v52, 0  ;;  %v373_v57 = vperm.slane %v347_v52, 1 }
  0x19   : > { %v273_v63 = vperm.slane %v813_v16, 1  ;;  %v292_v28 = vperm.slane %v813_v16, 2  ;;  %v469_v30 = vperm.slane %v832_v41, 1 }
  0x1a   : > { %v363_v17 = vperm.slane %v357_v56, 0  ;;  %v379_v21 = vperm.slane %v373_v57, 1 }
  0x1b   : > { %v279_v24 = vperm.slane %v273_v63, 1 }
  0x1d   : > { %724 = vset.pattern.permute.xlu0 %v744_v4 }
  0x1e   : > { %725 = vset.pattern.permute.xlu1 %v742_v1  ;;  %153 = vperm.xlu0 %724, %v144_v0   ;;  %v392_v0 = vperm.slane %v347_v52, 2 }
  0x1f   : > { %287 = vperm.xlu1 %725, %v145_v3  }
  0x20   : > { %728 = vset.pattern.permute.xlu2 %v744_v4  ;;  %v398_v25 = vperm.slane %v392_v0, 2 }
  0x21   : > { %446 = vperm.xlu2 %728, %v147_v6  }
  0x26   : > { %350 = vperm.xlu0 %724, %v146_v7  }
  0x27   : > { %727 = vset.pattern.permute.xlu1 %v743_v2 }
  0x28   : > { %368 = vperm.xlu1 %727, %v146_v7  }
  0x29   : > { %729 = vset.pattern.permute.xlu2 %v742_v1 }
  0x2a   : > { %483 = vperm.xlu2 %729, %v147_v6  }
  0x2e   : > { %545 = vperm.xlu0 %724, %v148_v8  }
  0x30   : > { %464 = vperm.xlu1 %727, %v147_v6  }
  0x32   : > { %387 = vperm.xlu2 %729, %v146_v7  }
  0x36   : > { %730 = vset.pattern.permute.xlu0 %v745_v5 }
  0x37   : > { %502 = vperm.xlu0 %730, %v147_v6   ;;  %v311_v6 = vperm.slane %v813_v16, 3 }
  0x38   : > { %563 = vperm.xlu1 %727, %v148_v8  }
  0x3a   : > { %732 = vset.pattern.permute.xlu2 %v745_v5 }
  0x3b   : > { %406 = vperm.xlu2 %732, %v146_v7   ;;  %v858_v7 = vperm.slane %v310_v38, 3 }
  0x40   : > { %731 = vset.pattern.permute.xlu1 %v742_v1  ;;  %v411_v1 = vperm.slane %v347_v52, 3 }
  0x41   : > { %582 = vperm.xlu1 %731, %v148_v8  }
  0x42   : > { %v417_v29 = vperm.slane %v411_v1, 3 }
  0x49   : > { %733 = vset.pattern.permute.xlu1 %v745_v5 }
  0x4a   : > { %601 = vperm.xlu1 %733, %v148_v8   ;;  %v860_v8 = vperm.slane %v453_v53, 0 }
  0x69   : > { %v789_v9 = vpop.permute.xlu2 %250 }
  0x6a   : > { %v264_v22 = vmul.f32 %v823_v35, %v789_v9  ;;  %v265_v27 = vmul.f32 %v825_v36, %v789_v9 }
  0x72   : > { %v791_v10 = vpop.permute.xlu2 %306 }
  0x7b   : > { %v799_v11 = vpop.permute.xlu2 %446 }
  0x7f   : > { %v801_v12 = vpop.permute.xlu1 %190  ;;  %v172_v13 = vpop.permute.xlu0 %171 }
  0x80   : > { %v183_v47 = vmul.f32 %v821_v32, %v172_v13  ;;  %v185_v48 = vmul.f32 %v182_v33, %v172_v13  ;;  %v202_v58 = vmul.f32 %v829_v39, %v801_v12  ;;  %v204_v59 = vmul.f32 %v201_v40, %v801_v12 }
  0x81   : > { %v184_v62 = vmul.f32 %v838_v44, %v172_v13  ;;  %v203_v23 = vmul.f32 %v836_v43, %v801_v12 }
  0x84   : > { %v818_v19 = vpop.permute.xlu2 %483 }
  0x85   : > { %v496_v16 = vmul.f32 %v818_v19, %v836_v43 }
  0x87   : > { %v810_v15 = vpop.permute.xlu0 %268 }
  0x88   : > { %v816_v18 = vpop.permute.xlu1 %209  ;;  %v280_v31 = vmul.f32 %v810_v15, %v821_v32  ;;  %v281_v12 = vmul.f32 %v810_v15, %v838_v44 }
  0x89   : > { %v221_v2 = vmul.f32 %v834_v42, %v816_v18  ;;  %v223_v3 = vmul.f32 %v220_v45, %v816_v18 }
  0x8c   : > { %v847_v55 = vpop.permute.xlu2 %387 }
  0x8d   : > { %v400_v52 = vmul.f32 %v847_v55, %v836_v43  ;;  %v401_v53 = vmul.f32 %v398_v25, %v847_v55  ;;  %v507_v25 = vperm.slane %v832_v41, 3 }
  0x90   : > { %v154_v46 = vpop.permute.xlu0 %153 }
  0x91   : > { %v167_v49 = vmul.f32 %v823_v35, %v154_v46  ;;  %v169_v50 = vmul.f32 %v166_v34, %v154_v46  ;;  %v842_v51 = vpop.permute.xlu1 %287  ;;  %v168_v54 = vmul.f32 %v825_v36, %v154_v46 }
  0x93   : > { %v186_v60 = vadd.f32 %v183_v47, %v167_v49  ;;  %v188_v61 = vadd.f32 %v185_v48, %v169_v50  ;;  %v187_v14 = vadd.f32 %v184_v62, %v168_v54  ;;  %v222_v49 = vmul.f32 %v858_v7, %v816_v18 }
  0x94   : > { %v299_v50 = vmul.f32 %v842_v51, %v829_v39 }
  0x95   : > { %v207_v4 = vadd.f32 %v204_v59, %v188_v61  ;;  %v205_v5 = vadd.f32 %v202_v58, %v186_v60  ;;  %v407_v38 = vpop.permute.xlu2 %406  ;;  %v206_v40 = vadd.f32 %v203_v23, %v187_v14  ;;  %v283_v59 = vadd.f32 %v280_v31, %v264_v22 }
  0x96   : > { %v419_v58 = vmul.f32 %v407_v38, %v858_v7  ;;  %v298_v60 = vperm.slane %v292_v28, 2  ;;  %v300_v61 = vmul.f32 %v842_v51, %v836_v43  ;;  %v420_v18 = vmul.f32 %v417_v29, %v407_v38 }
  0x97   : > { %v226_v13 = vadd.f32 %v223_v3, %v207_v4  ;;  %v224_v20 = vadd.f32 %v221_v2, %v205_v5  ;;  %v225_v63 = vadd.f32 %v222_v49, %v206_v40  ;;  %v266_v2 = vmul.f32 %v827_v37, %v789_v9 }
  0x98   : > { %v351_v26 = vpop.permute.xlu0 %350  ;;  %v284_v3 = vadd.f32 %v281_v12, %v265_v27  ;;  %v488_v4 = vperm.slane %v832_v41, 2  ;;  %v475_v14 = vperm.slane %v469_v30, 1  ;;  %v318_v22 = vmul.f32 %v834_v42, %v791_v10 }
  0x99   : > { %234 = vrot.lane.b32.xlu1 %v226_v13, %s746_s25  ;;  %230 = vrot.lane.b32.xlu2 %v224_v20, %s746_s25  ;;  %v365_v33 = vmul.f32 %v351_v26, %v825_v36  ;;  %v366_v45 = vmul.f32 %v363_v17, %v351_v26  ;;  %v364_v54 = vmul.f32 %v351_v26, %v823_v35  ;;  %v317_v29 = vperm.slane %v311_v6, 3 }
  0x9a   : > { %v369_v34 = vpop.permute.xlu1 %368  ;;  %v282_v17 = vmul.f32 %v279_v24, %v810_v15  ;;  %v302_v13 = vadd.f32 %v299_v50, %v283_v59  ;;  %v399_v20 = vmul.f32 %v847_v55, %v829_v39  ;;  %v303_v23 = vadd.f32 %v300_v61, %v284_v3  ;;  %v542_v61 = vld [vmem:[%s807_s24 + $0x8] sm:$0xf] }
  0x9b   : > { %v380_v46 = vmul.f32 %v369_v34, %v821_v32  ;;  %v381_v47 = vmul.f32 %v369_v34, %v838_v44  ;;  %v382_v48 = vmul.f32 %v379_v21, %v369_v34  ;;  %v301_v26 = vmul.f32 %v298_v60, %v842_v51 }
  0x9c   : > { %v418_v27 = vmul.f32 %v407_v38, %v834_v42  ;;  %v319_v24 = vmul.f32 %v858_v7, %v791_v10  ;;  %v461_v41 = vmul.f32 %v799_v11, %v825_v36  ;;  %v285_v30 = vadd.f32 %v282_v17, %v266_v2 }
  0x9d   : > { %v384_v56 = vadd.f32 %v381_v47, %v365_v33  ;;  %v385_v57 = vadd.f32 %v382_v48, %v366_v45  ;;  %v383_v62 = vadd.f32 %v380_v46, %v364_v54  ;;  %v321_v51 = vadd.f32 %v318_v22, %v302_v13 }
  0x9e   : > { %v462_v31 = vmul.f32 %v860_v8, %v799_v11  ;;  %v494_v12 = vperm.slane %v488_v4, 2  ;;  %v513_v33 = vperm.slane %v507_v25, 3  ;;  %v322_v34 = vadd.f32 %v319_v24, %v303_v23 }
  0x9f   : > { %v403_v0 = vadd.f32 %v400_v52, %v384_v56  ;;  %v404_v1 = vadd.f32 %v401_v53, %v385_v57  ;;  %v402_v55 = vadd.f32 %v399_v20, %v383_v62  ;;  %v304_v38 = vadd.f32 %v301_v26, %v285_v30 }
  0xa0   : > { %v893_v5 = vpop.permute.xlu0 %545  ;;  %v320_v47 = vmul.f32 %v317_v29, %v791_v10  ;;  %v327_v49 = vrot.slane %v321_v51, 4  ;;  %v497_v8 = vmul.f32 %v494_v12, %v818_v19  ;;  %v328_v54 = vrot.slane %v322_v34, 4 }
  0xa1   : > { %232 = vrot.lane.b32.xlu2 %v225_v63, %s746_s25  ;;  %v422_v21 = vadd.f32 %v419_v58, %v403_v0  ;;  %v423_v37 = vadd.f32 %v420_v18, %v404_v1  ;;  %v421_v45 = vadd.f32 %v418_v27, %v402_v55  ;;  %v460_v56 = vmul.f32 %v799_v11, %v823_v35 }
  0xa2   : > { %v465_v9 = vpop.permute.xlu1 %464  ;;  %v323_v10 = vadd.f32 %v320_v47, %v304_v38  ;;  %v495_v62 = vmul.f32 %v818_v19, %v829_v39  ;;  %v568_v0 = vperm.slane %v542_v61, 1  ;;  %v552_v2 = vperm.slane %v542_v61, 0 }
  0xa3   : > { %v477_v15 = vmul.f32 %v465_v9, %v838_v44  ;;  %429 = vrot.lane.b32.xlu0 %v422_v21, %s747_s26  ;;  %v478_v28 = vmul.f32 %v475_v14, %v465_v9  ;;  %431 = vrot.lane.b32.xlu1 %v423_v37, %s747_s26  ;;  %v476_v6 = vmul.f32 %v465_v9, %v821_v32  ;;  %v587_v11 = vperm.slane %v542_v61, 2 }
  0xa4   : > { %v329_v1 = vrot.slane %v323_v10, 4  ;;  %v574_v17 = vperm.slane %v568_v0, 1  ;;  %v558_v21 = vperm.slane %v552_v2, 0  ;;  %v606_v23 = vperm.slane %v542_v61, 3 }
  0xa5   : > { %v480_v40 = vadd.f32 %v477_v15, %v461_v41  ;;  %v481_v46 = vadd.f32 %v478_v28, %v462_v31  ;;  %v479_v59 = vadd.f32 %v476_v6, %v460_v56  ;;  %v593_v22 = vperm.slane %v587_v11, 2 }
  0xa6   : > { %v559_v26 = vmul.f32 %v893_v5, %v823_v35  ;;  %v560_v27 = vmul.f32 %v893_v5, %v825_v36  ;;  %v561_v24 = vmul.f32 %v558_v21, %v893_v5  ;;  %v612_v29 = vperm.slane %v606_v23, 3 }
  0xa7   : > { %v499_v57 = vadd.f32 %v496_v16, %v480_v40  ;;  %v500_v58 = vadd.f32 %v497_v8, %v481_v46  ;;  %v498_v4 = vadd.f32 %v495_v62, %v479_v59 }
  0xa9   : > { %v503_v48 = vpop.permute.xlu0 %502  ;;  %427 = vrot.lane.b32.xlu2 %v421_v45, %s747_s26 }
  0xaa   : > { %v515_v50 = vmul.f32 %v503_v48, %v858_v7  ;;  %v516_v52 = vmul.f32 %v513_v33, %v503_v48  ;;  %v564_v53 = vpop.permute.xlu1 %563  ;;  %v514_v63 = vmul.f32 %v503_v48, %v834_v42 }
  0xab   : > { %330 = vrot.lane.b32.xlu0 %v327_v49, %s748_s27  ;;  %332 = vrot.lane.b32.xlu1 %v328_v54, %s748_s27  ;;  %v575_v19 = vmul.f32 %v564_v53, %v821_v32  ;;  %v576_v9 = vmul.f32 %v564_v53, %v838_v44  ;;  %v577_v37 = vmul.f32 %v574_v17, %v564_v53 }
  0xac   : > { %v518_v60 = vadd.f32 %v515_v50, %v499_v57  ;;  %v519_v18 = vadd.f32 %v516_v52, %v500_v58  ;;  %v517_v20 = vadd.f32 %v514_v63, %v498_v4 }
  0xad   : > { %v578_v32 = vadd.f32 %v575_v19, %v559_v26  ;;  %v579_v41 = vadd.f32 %v576_v9, %v560_v27  ;;  %v580_v44 = vadd.f32 %v577_v37, %v561_v24 }
  0xae   : > { %v524_v3 = vrot.slane %v518_v60, 4  ;;  %v525_v14 = vrot.slane %v519_v18, 4  ;;  %v523_v25 = vrot.slane %v517_v20, 4 }
  0xb1   : > { %334 = vrot.lane.b32.xlu2 %v329_v1, %s748_s27 }
  0xb3   : > { %v583_v13 = vpop.permute.xlu1 %582  ;;  %528 = vrot.lane.b32.xlu0 %v524_v3, %s749_s28  ;;  %530 = vrot.lane.b32.xlu1 %v525_v14, %s749_s28 }
  0xb4   : > { %v594_v15 = vmul.f32 %v583_v13, %v829_v39  ;;  %v595_v55 = vmul.f32 %v583_v13, %v836_v43  ;;  %v596_v28 = vmul.f32 %v593_v22, %v583_v13 }
  0xb6   : > { %v597_v30 = vadd.f32 %v594_v15, %v578_v32  ;;  %v598_v51 = vadd.f32 %v595_v55, %v579_v41  ;;  %v599_v35 = vadd.f32 %v596_v28, %v580_v44 }
  0xb9   : > { %526 = vrot.lane.b32.xlu2 %v523_v25, %s749_s28 }
  0xbc   : > { %v602_v31 = vpop.permute.xlu1 %601 }
  0xbd   : > { %v613_v12 = vmul.f32 %v602_v31, %v834_v42  ;;  %v614_v36 = vmul.f32 %v602_v31, %v858_v7  ;;  %v615_v39 = vmul.f32 %v612_v29, %v602_v31 }
  0xbf   : > { %v617_v33 = vadd.f32 %v614_v36, %v598_v51  ;;  %v618_v43 = vadd.f32 %v615_v39, %v599_v35  ;;  %v616_v34 = vadd.f32 %v613_v12, %v597_v30 }
  0xc1   : > { %624 = vrot.lane.b32.xlu0 %v617_v33, %s750_s29  ;;  %626 = vrot.lane.b32.xlu1 %v618_v43, %s750_s29 }
  0xc2   : > { %622 = vrot.lane.b32.xlu2 %v616_v34, %s750_s29 }
  0xf3   : > { %v231_v5 = vpop.permute.xlu2 %230 }
  0xfb   : > { %v233_v42 = vpop.permute.xlu2 %232 }
  0xfc   : > { %v237_v7 = vsel %vm236_vm0, %v231_v5, %v233_v42 }
  0xfd   : > { %242 = vst [vmem:[%s940_s5] sm:$0xf] %v237_v7 }
 0x103   : > { %v428_v38 = vpop.permute.xlu2 %427 }
 0x10b   : > { %v235_v40 = vpop.permute.xlu1 %234  ;;  %v335_v45 = vpop.permute.xlu2 %334 }
 0x10c   : > { %v238_v46 = vsel %vm236_vm0, %v233_v42, %v235_v40  ;;  %245 = vst.msk [vmem:[%s940_s5 + $0x10] sm:$0xf] %vm244_vm1, %v235_v40 }
 0x10d   : > { %243 = vst [vmem:[%s940_s5 + $0x8] sm:$0xf] %v238_v46 }
 0x10e   : > { %345 = vst.msk [vmem:[%s940_s5 + $0x10] sm:$0xf0] %vm344_vm2, %v335_v45 }
 0x113   : > { %v527_v53 = vpop.permute.xlu2 %526 }
 0x115   : > { %v430_v47 = vpop.permute.xlu0 %429  ;;  %v432_v6 = vpop.permute.xlu1 %431 }
 0x116   : > { %v434_v16 = vsel %vm433_vm3, %v428_v38, %v430_v47  ;;  %v435_v48 = vsel %vm433_vm3, %v430_v47, %v432_v6  ;;  %441 = vst.msk [vmem:[%s940_s5 + $0x28] sm:$0xf] %vm244_vm1, %v432_v6 }
 0x117   : > { %439 = vst [vmem:[%s940_s5 + $0x18] sm:$0xf] %v434_v16 }
 0x118   : > { %440 = vst [vmem:[%s940_s5 + $0x20] sm:$0xf] %v435_v48 }
 0x11c   : > { %v623_v58 = vpop.permute.xlu2 %622 }
 0x11d   : > { %v331_v49 = vpop.permute.xlu0 %330  ;;  %v333_v8 = vpop.permute.xlu1 %332 }
 0x11e   : > { %v337_v50 = vsel %vm336_vm4, %v331_v49, %v333_v8  ;;  %v338_v52 = vsel %vm336_vm4, %v333_v8, %v335_v45 }
 0x11f   : > { %342 = vst [vmem:[%s940_s5] sm:$0xf0] %v337_v50 }
 0x120   : > { %343 = vst [vmem:[%s940_s5 + $0x8] sm:$0xf0] %v338_v52 }
 0x125   : > { %v529_v54 = vpop.permute.xlu0 %528  ;;  %v531_v10 = vpop.permute.xlu1 %530 }
 0x126   : > { %v533_v56 = vsel %vm532_vm5, %v527_v53, %v529_v54  ;;  %v534_v57 = vsel %vm532_vm5, %v529_v54, %v531_v10  ;;  %540 = vst.msk [vmem:[%s940_s5 + $0x28] sm:$0xf0] %vm344_vm2, %v531_v10 }
 0x127   : > { %538 = vst [vmem:[%s940_s5 + $0x18] sm:$0xf0] %v533_v56 }
 0x128   : > { %539 = vst [vmem:[%s940_s5 + $0x20] sm:$0xf0] %v534_v57 }
 0x133   : > { %v625_v59 = vpop.permute.xlu0 %624  ;;  %v627_v60 = vpop.permute.xlu1 %626 }
 0x134   : > { %v629_v61 = vsel %vm628_vm6, %v623_v58, %v625_v59  ;;  %v630_v18 = vsel %vm628_vm6, %v625_v59, %v627_v60  ;;  %636 = vst.msk [vmem:[%s940_s5 + $0x40] sm:$0xf] %vm244_vm1, %v627_v60 }
 0x135   : > { %634 = vst [vmem:[%s940_s5 + $0x30] sm:$0xf] %v629_v61 }
 0x136   : > { %635 = vst [vmem:[%s940_s5 + $0x38] sm:$0xf] %v630_v18 }
 0x137 PF: > { %s12_s9 = sadd.s32 1, %s740_s9  }
 0x138   : > { %p9_p4 = scmp.ge.s32.totalorder %s12_s9, 4  }
 0x13a   :  { %11 = sbr.rel (!%p9_p4) target bundleno = 1 (0x1), region = 58 }

</bundles_post_ra>
